<compile_context>
chip_gen: v7x
topology: tpu7x:2x2x1
jax: 0.10.0
libtpu: 0.0.40
codegen_flags: <defaults>
</compile_context>

<pallas_src>
import functools

import jax
import jax.numpy as jnp
from jax import lax
from jax.experimental import pallas as pl
from jax.experimental.pallas import tpu as pltpu


# ----------------------------------------------------------------------------
# Pallas kernel: full MLP for one batch tile.
# ----------------------------------------------------------------------------
def _mlp_kernel(num_hidden, *refs):
    # refs = (x_ref, w0, b0, w1, b1, ..., w_last, b_last, o_ref)
    x_ref = refs[0]
    o_ref = refs[-1]
    param_refs = refs[1:-1]

    h = x_ref[...]                                    # (TM, F), producer dtype
    # Hidden layers: batch on sublanes, features on lanes.  This Python loop is
    # unrolled at trace time (num_hidden is static), so each (1, out) bias
    # broadcast is materialized exactly once -- never re-broadcast in a traced
    # loop.  f32 elementwise (bias/ReLU) keeps v5e's VPU happy; bf16 h is an
    # optional VMEM-pressure relief on v6e/v7x only, skipped for precision.
    for layer in range(num_hidden):
        w = param_refs[2 * layer][...]                # (in, out)   bf16
        b = param_refs[2 * layer + 1][...]            # (1, out)    f32
        h = jnp.dot(h.astype(jnp.bfloat16), w,
                    preferred_element_type=jnp.float32) + b
        h = jnp.maximum(h, 0.0)                       # ReLU, f32 on the VPU

    # Final layer in transposed orientation so the store is lane-dense:
    #   (out_p, in) x (TM, in)^T -> (out_p, TM)   [NT matmul on the MXU]
    w_last = param_refs[2 * num_hidden][...]          # (out_p, in) bf16
    b_last = param_refs[2 * num_hidden + 1][...]      # (out_p, 1)  f32
    logits_t = lax.dot_general(
        w_last, h.astype(jnp.bfloat16),
        dimension_numbers=(((1,), (1,)), ((), ())),   # contract both on `in`
        preferred_element_type=jnp.float32) + b_last  # (out_p, TM) f32

    # Exact sigmoid: exp on the EUP, exact reciprocal on the VPU.  The approx
    # reciprocal can exceed 1.0 for large positive logits and NaN downstream
    # log(1-p)/BCE; the exact divide is negligible in this DMA-bound kernel.
    validity = 1.0 / (1.0 + jnp.exp(-logits_t))
    o_ref[...] = validity.astype(o_ref.dtype)


# ----------------------------------------------------------------------------
# Wrapper: generation-aware tiling + pallas_call plumbing.
# ----------------------------------------------------------------------------
def _round_up(x, m):
    return (x + m - 1) // m * m


def _vmem_capacity_bytes():
    """Physical VMEM per TensorCore for the current chip generation."""
    try:
        return int(pltpu.get_tpu_info().vmem_capacity_bytes)
    except Exception:
        return 64 << 20   # conservative fallback = v7x per-TC capacity


def _resident_param_bytes(param_arrays):
    """VMEM bytes of the single-buffered resident weights/biases, including
    (sublane, lane) layout padding (bf16 packs 16 rows per sublane tile)."""
    total = 0
    for p in param_arrays:
        r, c = p.shape
        sub = 16 if p.dtype == jnp.bfloat16 else 8
        total += _round_up(r, sub) * _round_up(c, 128) * p.dtype.itemsize
    return total


def _per_row_vmem_bytes(feat, x_itemsize, hidden_dims, out_p):
    """Per-batch-row VMEM bytes at the real (8,128) layout:
       2x x tile (double-buffered input)  +  2x (out_p, TM) output tile
       + ~two live f32 h tiles + one bf16 cast copy (compiler-held)."""
    feat_pad = _round_up(feat, 128)
    max_w = max([feat_pad] + [_round_up(d, 128) for d in hidden_dims])
    return (2 * feat_pad * x_itemsize
            + 2 * _round_up(out_p, 8) * 4
            + 10 * max_w)


def _choose_block_m(batch, per_row_bytes, params_bytes):
    """Largest batch tile (multiple of 128 rows) whose full per-step footprint
    fits ~45% of physical VMEM, with a small-batch / megacore guard:
      - whole batch fits one tile  -> single grid step (no exposed pipeline)
      - otherwise                  -> aim for >=4 grid steps so each core
                                      (2 TCs on v7x) keeps >=2 overlapped steps."""
    vmem_cap = _vmem_capacity_bytes()
    budget = int(vmem_cap * 0.45)          # headroom for compiler scratch/regalloc
    cap_rows = max(128, (budget - params_bytes) // per_row_bytes)
    cap_rows = int(cap_rows // 128 * 128)

    padded_batch = _round_up(batch, 128)
    if padded_batch <= cap_rows:
        return padded_batch                # one tile, one grid step
    target = max(128, (padded_batch // 4) // 128 * 128)
    return max(128, min(cap_rows, target))


def discriminator_forward(x, params, *, block_m=None):
    """x: [B, ...];  params from prepare_params().  Returns f32 [B, out_size].
    If block_m is given it must be a multiple of 128 (or cover the whole batch)."""
    batch = x.shape[0]
    x2d = x.reshape(batch, -1)          # x.view(x.size(0), -1); NO dtype cast here
    feat = x2d.shape[1]

    num_hidden = len(params) - 1
    hidden_dims = [w.shape[1] for w, _ in params[:num_hidden]]
    w_last, b_last = params[-1]         # (out, in) bf16, (out, 1) f32
    out_size = w_last.shape[0]

    # Pad out_size to a sublane multiple so the final store is a full vreg.
    out_p = _round_up(out_size, 8)
    if out_p != out_size:
        w_last = jnp.pad(w_last, ((0, out_p - out_size), (0, 0)))
        b_last = jnp.pad(b_last, ((0, out_p - out_size), (0, 0)))

    param_arrays = [a for wb in params[:num_hidden] for a in wb] + [w_last, b_last]
    params_bytes = _resident_param_bytes(param_arrays)
    per_row_bytes = _per_row_vmem_bytes(feat, x2d.dtype.itemsize, hidden_dims, out_p)

    if block_m is None:
        block_m = _choose_block_m(batch, per_row_bytes, params_bytes)
    else:
        block_m = int(block_m)

    padded = _round_up(batch, block_m)
    if padded != batch:
        x2d = jnp.pad(x2d, ((0, padded - batch), (0, 0)))
    grid = (padded // block_m,)

    # Scoped VMEM limit with headroom (v5e default is only 16 MiB, v6e/v7x 32 MiB).
    vmem_cap = _vmem_capacity_bytes()
    footprint = params_bytes + block_m * per_row_bytes
    vmem_limit = int(min(vmem_cap * 0.9, max(footprint * 1.5, 32 << 20)))

    # Advisory cost estimate so XLA schedules producer / the output transpose
    # sensibly around the custom call.
    dims = [feat] + hidden_dims + [out_size]
    flops = 2 * batch * sum(a * b for a, b in zip(dims[:-1], dims[1:]))
    logical_param_bytes = sum(int(p.size) * p.dtype.itemsize for p in param_arrays)
    cost = pl.CostEstimate(
        flops=flops,
        transcendentals=batch * out_size,
        bytes_accessed=batch * feat * x2d.dtype.itemsize
                       + logical_param_bytes + batch * out_size * 4)

    flat_args = [x2d]
    in_specs = [pl.BlockSpec((block_m, feat), lambda i: (i, 0))]

    def resident(shape):
        # Constant index_map -> fetched once, VMEM-resident across grid steps;
        # Buffered(1) -> no useless second pipeline buffer for the weights.
        return pl.BlockSpec(shape, lambda i: (0, 0),
                            pipeline_mode=pl.Buffered(buffer_count=1))

    for p in param_arrays:
        flat_args.append(p)
        in_specs.append(resident(p.shape))

    out_t = pl.pallas_call(
        functools.partial(_mlp_kernel, num_hidden),
        out_shape=jax.ShapeDtypeStruct((out_p, padded), jnp.float32),
        grid=grid,
        in_specs=in_specs,
        out_specs=pl.BlockSpec((out_p, block_m), lambda i: (0, i)),
        compiler_params=pltpu.CompilerParams(
            dimension_semantics=("parallel",),        # megacore split on v7x
            vmem_limit_bytes=vmem_limit),
        cost_estimate=cost,
    )(*flat_args)

    # (out_p, padded_B) -> (B, out): tiny layout plumbing outside the kernel.
    return out_t[:out_size, :batch].T


# ----------------------------------------------------------------------------
# Parameter init (nn.Linear-style) and conversion to the kernel layout.
# ----------------------------------------------------------------------------
def init_discriminator_params(key, input_size, hidden_size, output_size):
    """f32 'math layout' params [(W [in,out], b [out]), ...] with
    U(-1/sqrt(fan_in), 1/sqrt(fan_in)) like torch.nn.Linear."""
    dims = [input_size] + list(hidden_size) + [output_size]
    params = []
    for i in range(len(dims) - 1):
        fan_in, fan_out = dims[i], dims[i + 1]
        key, kw, kb = jax.random.split(key, 3)
        bound = 1.0 / float(fan_in) ** 0.5
        w = jax.random.uniform(kw, (fan_in, fan_out), jnp.float32, -bound, bound)
        b = jax.random.uniform(kb, (fan_out,), jnp.float32, -bound, bound)
        params.append((w, b))
    return params


def prepare_params(params_f32):
    """Kernel layout: hidden layers (W [in,out] bf16, b [1,out] f32);
    final layer (W [out,in] bf16 -- PyTorch-native orientation, b [out,1] f32).
    NOTE: bf16 weights are a deliberate precision tradeoff (~1e-2 vs f32 ref)."""
    prepped = []
    n = len(params_f32)
    for i, (w, b) in enumerate(params_f32):
        if i < n - 1:
            prepped.append((w.astype(jnp.bfloat16), b.reshape(1, -1)))
        else:
            prepped.append((w.T.astype(jnp.bfloat16), b.reshape(-1, 1)))
    return prepped


# ----------------------------------------------------------------------------
# Pure-JAX f32 reference for correctness checking.
# ----------------------------------------------------------------------------
def _reference_forward(x, params_f32):
    h = x.reshape(x.shape[0], -1).astype(jnp.float32)
    for i, (w, b) in enumerate(params_f32):
        h = h @ w + b
        if i < len(params_f32) - 1:
            h = jnp.maximum(h, 0.0)
    return jax.nn.sigmoid(h)


if __name__ == "__main__":
    key = jax.random.PRNGKey(0)
    k_x, k_p = jax.random.split(key)

    # Small shapes consistent with the module: a [256, 2, 4, 4] tensor flattens
    # to 32 features; hidden_size=[64, 32]; output_size=1.
    batch, c, h, w = 256, 2, 4, 4
    input_size = c * h * w
    hidden_size = [64, 32]
    output_size = 1

    x = jax.random.normal(k_x, (batch, c, h, w), jnp.float32)
    params_f32 = init_discriminator_params(k_p, input_size, hidden_size, output_size)
    params = prepare_params(params_f32)
    expected = _reference_forward(x, params_f32)

    # 1) Auto tiling: whole batch fits one tile -> single grid step (no
    #    exposed pipeline prologue/epilogue).
    v_auto = jax.block_until_ready(discriminator_forward(x, params))
    # 2) Forced 128-row tile -> 2-step grid exercises the streamed/pipelined path.
    v_tiled = jax.block_until_ready(discriminator_forward(x, params, block_m=128))

    for validity in (v_auto, v_tiled):
        assert validity.shape == (batch, output_size)
        max_err = float(jnp.max(jnp.abs(validity.astype(jnp.float32) - expected)))
        assert max_err < 2e-2, f"Pallas output mismatch vs reference (max abs err {max_err})"

    print("KERNEL_OK")
</pallas_src>

<mosaic_0001>
module attributes {stable_mosaic.version = 11 : i64} {
  func.func @_mlp_kernel(%arg0: i32, %arg1: memref<256x32xf32, #tpu.memory_space<vmem>>, %arg2: memref<32x64xbf16, #tpu.memory_space<vmem>>, %arg3: memref<1x64xf32, #tpu.memory_space<vmem>>, %arg4: memref<64x32xbf16, #tpu.memory_space<vmem>>, %arg5: memref<1x32xf32, #tpu.memory_space<vmem>>, %arg6: memref<8x32xbf16, #tpu.memory_space<vmem>>, %arg7: memref<8x1xf32, #tpu.memory_space<vmem>>, %arg8: memref<8x256xf32, #tpu.memory_space<vmem>>) attributes {dimension_semantics = [#tpu.dimension_semantics<parallel>], iteration_bounds = array<i64: 1>, scalar_prefetch = 0 : i64, scratch_operands = 0 : i64, tpu.core_type = #tpu.core_type<tc>, window_params = [{transform_indices = @transform_0, window_bounds = array<i64: 256, 32>}, {pipeline_mode = #tpu.pipeline_mode<synchronous>, transform_indices = @transform_1, window_bounds = array<i64: 32, 64>}, {pipeline_mode = #tpu.pipeline_mode<synchronous>, transform_indices = @transform_2, window_bounds = array<i64: 1, 64>}, {pipeline_mode = #tpu.pipeline_mode<synchronous>, transform_indices = @transform_3, window_bounds = array<i64: 64, 32>}, {pipeline_mode = #tpu.pipeline_mode<synchronous>, transform_indices = @transform_4, window_bounds = array<i64: 1, 32>}, {pipeline_mode = #tpu.pipeline_mode<synchronous>, transform_indices = @transform_5, window_bounds = array<i64: 8, 32>}, {pipeline_mode = #tpu.pipeline_mode<synchronous>, transform_indices = @transform_6, window_bounds = array<i64: 8, 1>}, {transform_indices = @transform_7, window_bounds = array<i64: 8, 256>}]} {
    %c0 = arith.constant 0 : index
    %c0_0 = arith.constant 0 : index
    %0 = vector.load %arg1[%c0, %c0_0] : memref<256x32xf32, #tpu.memory_space<vmem>>, vector<256x32xf32>
    %c0_1 = arith.constant 0 : index
    %c0_2 = arith.constant 0 : index
    %1 = vector.load %arg2[%c0_1, %c0_2] : memref<32x64xbf16, #tpu.memory_space<vmem>>, vector<32x64xbf16>
    %c0_3 = arith.constant 0 : index
    %c0_4 = arith.constant 0 : index
    %2 = vector.load %arg3[%c0_3, %c0_4] : memref<1x64xf32, #tpu.memory_space<vmem>>, vector<1x64xf32>
    %3 = arith.truncf %0 : vector<256x32xf32> to vector<256x32xbf16>
    %cst = arith.constant dense<0.000000e+00> : vector<256x64xf32>
    %4 = tpu.matmul %3, %1, %cst {dimension_numbers = #tpu.dot_dimension_numbers<[1], [0], [0], [1], [0, 0, 1, 1], [], []>} : vector<256x32xbf16>, vector<32x64xbf16>, vector<256x64xf32> -> vector<256x64xf32>
    %5 = vector.broadcast %2 : vector<1x64xf32> to vector<256x64xf32>
    %6 = arith.addf %4, %5 : vector<256x64xf32>
    %cst_5 = arith.constant 0.000000e+00 : f32
    %7 = vector.broadcast %cst_5 : f32 to vector<256x64xf32>
    %8 = arith.maximumf %6, %7 : vector<256x64xf32>
    %c0_6 = arith.constant 0 : index
    %c0_7 = arith.constant 0 : index
    %9 = vector.load %arg4[%c0_6, %c0_7] : memref<64x32xbf16, #tpu.memory_space<vmem>>, vector<64x32xbf16>
    %c0_8 = arith.constant 0 : index
    %c0_9 = arith.constant 0 : index
    %10 = vector.load %arg5[%c0_8, %c0_9] : memref<1x32xf32, #tpu.memory_space<vmem>>, vector<1x32xf32>
    %11 = arith.truncf %8 : vector<256x64xf32> to vector<256x64xbf16>
    %cst_10 = arith.constant dense<0.000000e+00> : vector<256x32xf32>
    %12 = tpu.matmul %11, %9, %cst_10 {dimension_numbers = #tpu.dot_dimension_numbers<[1], [0], [0], [1], [0, 0, 1, 1], [], []>} : vector<256x64xbf16>, vector<64x32xbf16>, vector<256x32xf32> -> vector<256x32xf32>
    %13 = vector.broadcast %10 : vector<1x32xf32> to vector<256x32xf32>
    %14 = arith.addf %12, %13 : vector<256x32xf32>
    %cst_11 = arith.constant 0.000000e+00 : f32
    %15 = vector.broadcast %cst_11 : f32 to vector<256x32xf32>
    %16 = arith.maximumf %14, %15 : vector<256x32xf32>
    %c0_12 = arith.constant 0 : index
    %c0_13 = arith.constant 0 : index
    %17 = vector.load %arg6[%c0_12, %c0_13] : memref<8x32xbf16, #tpu.memory_space<vmem>>, vector<8x32xbf16>
    %c0_14 = arith.constant 0 : index
    %c0_15 = arith.constant 0 : index
    %18 = vector.load %arg7[%c0_14, %c0_15] : memref<8x1xf32, #tpu.memory_space<vmem>>, vector<8x1xf32>
    %19 = arith.truncf %16 : vector<256x32xf32> to vector<256x32xbf16>
    %cst_16 = arith.constant dense<0.000000e+00> : vector<8x256xf32>
    %20 = tpu.matmul %17, %19, %cst_16 {dimension_numbers = #tpu.dot_dimension_numbers<[1], [1], [0], [0], [0, 0, 1, 0], [], []>} : vector<8x32xbf16>, vector<256x32xbf16>, vector<8x256xf32> -> vector<8x256xf32>
    %21 = vector.broadcast %18 : vector<8x1xf32> to vector<8x256xf32>
    %22 = arith.addf %20, %21 : vector<8x256xf32>
    %cst_17 = arith.constant 0.000000e+00 : f32
    %23 = vector.broadcast %cst_17 : f32 to vector<8x256xf32>
    %24 = arith.subf %23, %22 : vector<8x256xf32>
    %25 = math.exp %24 : vector<8x256xf32>
    %cst_18 = arith.constant 1.000000e+00 : f32
    %26 = vector.broadcast %cst_18 : f32 to vector<8x256xf32>
    %27 = arith.addf %26, %25 : vector<8x256xf32>
    %cst_19 = arith.constant 1.000000e+00 : f32
    %28 = vector.broadcast %cst_19 : f32 to vector<8x256xf32>
    %29 = arith.divf %28, %27 : vector<8x256xf32>
    %c0_20 = arith.constant 0 : index
    %c0_21 = arith.constant 0 : index
    %30 = vector.load %arg8[%c0_20, %c0_21] : memref<8x256xf32, #tpu.memory_space<vmem>>, vector<8x256xf32>
    tpu.vector_store %arg8[%c0_20, %c0_21], %29 {strides = array<i32>} : memref<8x256xf32, #tpu.memory_space<vmem>>, vector<8x256xf32>,
    return
  }
  func.func @transform_0(%arg0: i32) -> (i32, i32) {
    %c0_i32 = arith.constant 0 : i32
    %c0_i32_0 = arith.constant 0 : i32
    return %arg0, %c0_i32 : i32, i32
  }
  func.func @transform_1(%arg0: i32) -> (i32, i32) {
    %c0_i32 = arith.constant 0 : i32
    %c0_i32_0 = arith.constant 0 : i32
    %c0_i32_1 = arith.constant 0 : i32
    return %c0_i32, %c0_i32_0 : i32, i32
  }
  func.func @transform_2(%arg0: i32) -> (i32, i32) {
    %c0_i32 = arith.constant 0 : i32
    %c0_i32_0 = arith.constant 0 : i32
    %c0_i32_1 = arith.constant 0 : i32
    return %c0_i32, %c0_i32_0 : i32, i32
  }
  func.func @transform_3(%arg0: i32) -> (i32, i32) {
    %c0_i32 = arith.constant 0 : i32
    %c0_i32_0 = arith.constant 0 : i32
    %c0_i32_1 = arith.constant 0 : i32
    return %c0_i32, %c0_i32_0 : i32, i32
  }
  func.func @transform_4(%arg0: i32) -> (i32, i32) {
    %c0_i32 = arith.constant 0 : i32
    %c0_i32_0 = arith.constant 0 : i32
    %c0_i32_1 = arith.constant 0 : i32
    return %c0_i32, %c0_i32_0 : i32, i32
  }
  func.func @transform_5(%arg0: i32) -> (i32, i32) {
    %c0_i32 = arith.constant 0 : i32
    %c0_i32_0 = arith.constant 0 : i32
    %c0_i32_1 = arith.constant 0 : i32
    return %c0_i32, %c0_i32_0 : i32, i32
  }
  func.func @transform_6(%arg0: i32) -> (i32, i32) {
    %c0_i32 = arith.constant 0 : i32
    %c0_i32_0 = arith.constant 0 : i32
    %c0_i32_1 = arith.constant 0 : i32
    return %c0_i32, %c0_i32_0 : i32, i32
  }
  func.func @transform_7(%arg0: i32) -> (i32, i32) {
    %c0_i32 = arith.constant 0 : i32
    %c0_i32_0 = arith.constant 0 : i32
    return %c0_i32, %arg0 : i32, i32
  }
}

</mosaic_0001>

<bundles_post_ra>
// kernel: tpu_custom_call.1
= control target key start
LH: loop header
LB: loop body
LE: loop exit
PB: predicated region body
PF: predicated region fallthrough
CT: control target
= control target key end

     0   :  { %vm99_vm0 = vcmask 261120   ;;  %s1329_s0 = inlined_call_operand.vmem [shape: f32[256,32], index: 0, kind: input, shape index: {}]   ;;  %s1330_s1 = inlined_call_operand.vmem [shape: bf16[32,64], index: 1, kind: input, shape index: {}]   ;;  %s1331_s2 = inlined_call_operand.vmem [shape: f32[1,64], index: 2, kind: input, shape index: {}]   ;;  %s1332_s3 = inlined_call_operand.vmem [shape: bf16[64,32], index: 3, kind: input, shape index: {}]   ;;  %s1333_s4 = inlined_call_operand.vmem [shape: f32[1,32], index: 4, kind: input, shape index: {}]   ;;  %s1334_s5 = inlined_call_operand.vmem [shape: bf16[8,32], index: 5, kind: input, shape index: {}]   ;;  %s1335_s6 = inlined_call_operand.vmem [shape: f32[8,1], index: 6, kind: input, shape index: {}]   ;;  %s1336_s7 = inlined_call_operand.hbm [shape: f32[8,256], index: 7, kind: output, shape index: {}]  }
   0x1   :  { %v965_v0 = vld [vmem:[%s1330_s1] sm:$0xff]   ;;  %v966_v1 = vld [vmem:[%s1330_s1 + $0x8] sm:$0xff]   ;;  %v30_v5 = vld [vmem:[%s1329_s0 + $0x10] sm:$0xff] }
   0x2   :  { %878 = vmatprep.subr.bf16.mxu0 %v965_v0  ;;  %v28_v2 = vld [vmem:[%s1329_s0] sm:$0xff]  ;;  %v29_v3 = vld [vmem:[%s1329_s0 + $0x8] sm:$0xff]  ;;  %v31_v6 = vld [vmem:[%s1329_s0 + $0x18] sm:$0xff] }
   0x3   :  { %879 = vmatpush3.bf16.msra.mxu0 %v965_v0  ;;  %v65_v4 = vpack.c.bf16 %v29_v3, %v28_v2  ;;  %v32_v7 = vld [vmem:[%s1329_s0 + $0x20] sm:$0xff]  ;;  %v33_v8 = vld [vmem:[%s1329_s0 + $0x28] sm:$0xff]  ;;  %v66_v9 = vpack.c.bf16 %v31_v6, %v30_v5  ;;  %v34_v11 = vld [vmem:[%s1329_s0 + $0x30] sm:$0xff] }
   0x4   :  { %880 = vmatprep.subr.bf16.mxu0 %v966_v1  ;;  %v67_v10 = vpack.c.bf16 %v33_v8, %v32_v7  ;;  %v35_v12 = vld [vmem:[%s1329_s0 + $0x38] sm:$0xff]  ;;  %v36_v13 = vld [vmem:[%s1329_s0 + $0x40] sm:$0xff]  ;;  %v37_v14 = vld [vmem:[%s1329_s0 + $0x48] sm:$0xff] }
   0x5   :  { %882 = vmatprep.mubr.msk.bf16.mxu0 %vm99_vm0, %v65_v4  ;;  %v967_v15 = vld [vmem:[%s1332_s3] sm:$0xff]   ;;  %v68_v16 = vpack.c.bf16 %v35_v12, %v34_v11  ;;  %v968_v17 = vld [vmem:[%s1332_s3 + $0x8] sm:$0xff]   ;;  %v69_v18 = vpack.c.bf16 %v37_v14, %v36_v13 }
   0x6   :  { %914 = vmatprep.subr.bf16.mxu1 %v967_v15 }
   0x7   :  { %881 = vmatpush3.bf16.msra.mxu0 %v966_v1  ;;  %915 = vmatpush3.bf16.msra.mxu1 %v967_v15 }
   0xa   :  { %883 = vmatmul.mubr.msk.bf16.vlgmr.msra.gmra.mrb[0].mxu0 %vm99_vm0, %v66_v9 }
   0xb   :  { %886 = vmatprep.mubr.msk.bf16.mxu0 %vm99_vm0, %v67_v10 }
   0xc   :  { %12 = vsyncpa [#allocation3], 0  ;;  %916 = vmatprep.subr.bf16.mxu1 %v968_v17  ;;  %v38_v19 = vld [vmem:[%s1329_s0 + $0x50] sm:$0xff]  ;;  %v39_v20 = vld [vmem:[%s1329_s0 + $0x58] sm:$0xff]  ;;  %vm396_vm1 = vcmask 523264  }
   0xd   :  { %v40_v21 = vld [vmem:[%s1329_s0 + $0x60] sm:$0xff]  ;;  %v41_v22 = vld [vmem:[%s1329_s0 + $0x68] sm:$0xff]  ;;  %917 = vmatpush3.bf16.msra.mxu1 %v968_v17  ;;  %v70_v23 = vpack.c.bf16 %v39_v20, %v38_v19  ;;  %v42_v25 = vld [vmem:[%s1329_s0 + $0x70] sm:$0xff] }
   0xe   :  { %v71_v24 = vpack.c.bf16 %v41_v22, %v40_v21  ;;  %v43_v26 = vld [vmem:[%s1329_s0 + $0x78] sm:$0xff]  ;;  %v44_v27 = vld [vmem:[%s1329_s0 + $0x80] sm:$0xff]  ;;  %v45_v28 = vld [vmem:[%s1329_s0 + $0x88] sm:$0xff] }
   0xf   :  { %v72_v29 = vpack.c.bf16 %v43_v26, %v42_v25  ;;  %v73_v30 = vpack.c.bf16 %v45_v28, %v44_v27  ;;  %v46_v31 = vld [vmem:[%s1329_s0 + $0x90] sm:$0xff]  ;;  %v47_v32 = vld [vmem:[%s1329_s0 + $0x98] sm:$0xff]  ;;  %v48_v33 = vld [vmem:[%s1329_s0 + $0xa0] sm:$0xff] }
  0x10   :  { %v49_v34 = vld [vmem:[%s1329_s0 + $0xa8] sm:$0xff]  ;;  %v74_v35 = vpack.c.bf16 %v47_v32, %v46_v31  ;;  %v50_v37 = vld [vmem:[%s1329_s0 + $0xb0] sm:$0xff]  ;;  %v51_v38 = vld [vmem:[%s1329_s0 + $0xb8] sm:$0xff] }
  0x11   :  { %v75_v36 = vpack.c.bf16 %v49_v34, %v48_v33  ;;  %v52_v39 = vld [vmem:[%s1329_s0 + $0xc0] sm:$0xff]  ;;  %v53_v40 = vld [vmem:[%s1329_s0 + $0xc8] sm:$0xff]  ;;  %v76_v41 = vpack.c.bf16 %v51_v38, %v50_v37  ;;  %v54_v43 = vld [vmem:[%s1329_s0 + $0xd0] sm:$0xff] }
  0x12   :  { %887 = vmatmul.mubr.msk.bf16.gmra.mrb[4].mxu0 %vm99_vm0, %v68_v16  ;;  %v77_v42 = vpack.c.bf16 %v53_v40, %v52_v39  ;;  %v55_v44 = vld [vmem:[%s1329_s0 + $0xd8] sm:$0xff]  ;;  %v56_v45 = vld [vmem:[%s1329_s0 + $0xe0] sm:$0xff]  ;;  %v57_v46 = vld [vmem:[%s1329_s0 + $0xe8] sm:$0xff] }
  0x13   :  { %890 = vmatprep.mubr.msk.bf16.mxu0 %vm99_vm0, %v69_v18  ;;  %v78_v47 = vpack.c.bf16 %v55_v44, %v54_v43  ;;  %v79_v48 = vpack.c.bf16 %v57_v46, %v56_v45  ;;  %v58_v49 = vld [vmem:[%s1329_s0 + $0xf0] sm:$0xff]  ;;  %v59_v50 = vld [vmem:[%s1329_s0 + $0xf8] sm:$0xff]  ;;  %v1178_v54 = vld [vmem:[%s1331_s2] ss:$0 sm:$0xff] }
  0x14   :  { %v80_v51 = vpack.c.bf16 %v59_v50, %v58_v49  ;;  %v969_v52 = vld [vmem:[%s1332_s3 + $0x10] sm:$0xff]   ;;  %v970_v53 = vld [vmem:[%s1332_s3 + $0x18] sm:$0xff]  }
  0x15   :  { %918 = vmatprep.subr.bf16.mxu1 %v969_v52 }
  0x16   :  { %919 = vmatpush3.bf16.msra.mxu1 %v969_v52 }
  0x17   :  { %920 = vmatprep.subr.bf16.mxu1 %v970_v53 }
  0x1a   :  { %891 = vmatmul.mubr.msk.bf16.gmra.mrb[8].mxu0 %vm99_vm0, %v70_v23  ;;  %921 = vmatpush3.bf16.msra.mxu1 %v970_v53 }
  0x1b   :  { %894 = vmatprep.mubr.msk.bf16.mxu0 %vm99_vm0, %v71_v24 }
  0x22   :  { %895 = vmatmul.mubr.msk.bf16.gmra.mrb[12].mxu0 %vm99_vm0, %v72_v29 }
  0x23   :  { %898 = vmatprep.mubr.msk.bf16.mxu0 %vm99_vm0, %v73_v30 }
  0x2a   :  { %899 = vmatmul.mubr.msk.bf16.gmra.mrb[16].mxu0 %vm99_vm0, %v74_v35 }
  0x2b   :  { %902 = vmatprep.mubr.msk.bf16.mxu0 %vm99_vm0, %v75_v36 }
  0x32   :  { %903 = vmatmul.mubr.msk.bf16.gmra.mrb[20].mxu0 %vm99_vm0, %v76_v41 }
  0x33   :  { %906 = vmatprep.mubr.msk.bf16.mxu0 %vm99_vm0, %v77_v42 }
  0x3a   :  { %907 = vmatmul.mubr.msk.bf16.gmra.mrb[24].mxu0 %vm99_vm0, %v78_v47 }
  0x3b   :  { %910 = vmatprep.mubr.msk.bf16.mxu0 %vm99_vm0, %v79_v48 }
  0x42   :  { %911 = vmatmul.mubr.msk.bf16.gmra.mrb[28].mxu0 %vm99_vm0, %v80_v51 }
  0xdd   :  { %v884_v55 = vpop.f32.mrb[0].mxu0 }
  0xde   :  { %v191_v56 = vadd.f32 %v884_v55, %v1178_v54  ;;  %v182_v57 = vpop.f32.mrb[1].mxu0 }
  0xdf   :  { %v183_v58 = vadd.f32 %v1178_v54, %v182_v57  ;;  %v885_v59 = vpop.f32.mrb[2].mxu0 }
  0xe0   :  { %v194_v60 = vadd.f32 %v885_v59, %v1178_v54  ;;  %v185_v61 = vpop.f32.mrb[3].mxu0  ;;  %v311_v63 = vmax.f32 %v191_v56, 0.0 }
  0xe1   :  { %v186_v62 = vadd.f32 %v1178_v54, %v185_v61  ;;  %v309_v1 = vmax.f32 %v183_v58, 0.0 }
  0xe2   :  { %v312_v0 = vmax.f32 %v194_v60, 0.0 }
  0xe3   :  { %v310_v2 = vmax.f32 %v186_v62, 0.0 }
  0xe4   :  { %v351_v3 = vpack.c.bf16 %v312_v0, %v311_v63 }
  0xe5   :  { %v888_v4 = vpop.f32.mrb[4].mxu0  ;;  %v350_v5 = vpack.c.bf16 %v310_v2, %v309_v1 }
  0xe6   :  { %v207_v6 = vadd.f32 %v888_v4, %v1178_v54  ;;  %v198_v7 = vpop.f32.mrb[5].mxu0 }
  0xe7   :  { %v199_v8 = vadd.f32 %v1178_v54, %v198_v7  ;;  %v889_v9 = vpop.f32.mrb[6].mxu0  ;;  %922 = vmatprep.mubr.msk.bf16.mxu1 %vm396_vm1, %v350_v5 }
  0xe8   :  { %v210_v10 = vadd.f32 %v889_v9, %v1178_v54  ;;  %v201_v11 = vpop.f32.mrb[7].mxu0  ;;  %923 = vmatmul.mubr.msk.bf16.vlgmr.msra.gmra.mrb[0].mxu1 %vm396_vm1, %v351_v3  ;;  %v315_v13 = vmax.f32 %v207_v6, 0.0 }
  0xe9   :  { %v202_v12 = vadd.f32 %v1178_v54, %v201_v11  ;;  %v313_v15 = vmax.f32 %v199_v8, 0.0 }
  0xea   :  { %v316_v14 = vmax.f32 %v210_v10, 0.0 }
  0xeb   :  { %v314_v16 = vmax.f32 %v202_v12, 0.0 }
  0xec   :  { %v353_v17 = vpack.c.bf16 %v316_v14, %v315_v13 }
  0xed   :  { %v352_v18 = vpack.c.bf16 %v314_v16, %v313_v15  ;;  %v892_v19 = vpop.f32.mrb[8].mxu0 }
  0xee   :  { %v223_v20 = vadd.f32 %v892_v19, %v1178_v54  ;;  %v214_v21 = vpop.f32.mrb[9].mxu0 }
  0xef   :  { %v215_v22 = vadd.f32 %v1178_v54, %v214_v21  ;;  %v893_v23 = vpop.f32.mrb[10].mxu0  ;;  %926 = vmatprep.mubr.msk.bf16.mxu1 %vm396_vm1, %v352_v18 }
  0xf0   :  { %v226_v24 = vadd.f32 %v893_v23, %v1178_v54  ;;  %v217_v25 = vpop.f32.mrb[11].mxu0  ;;  %927 = vmatmul.mubr.msk.bf16.gmra.mrb[4].mxu1 %vm396_vm1, %v353_v17  ;;  %v319_v27 = vmax.f32 %v223_v20, 0.0 }
  0xf1   :  { %v218_v26 = vadd.f32 %v1178_v54, %v217_v25  ;;  %v317_v29 = vmax.f32 %v215_v22, 0.0 }
  0xf2   :  { %v320_v28 = vmax.f32 %v226_v24, 0.0 }
  0xf3   :  { %v318_v30 = vmax.f32 %v218_v26, 0.0 }
  0xf4   :  { %v355_v31 = vpack.c.bf16 %v320_v28, %v319_v27 }
  0xf5   :  { %v354_v32 = vpack.c.bf16 %v318_v30, %v317_v29  ;;  %v896_v33 = vpop.f32.mrb[12].mxu0 }
  0xf6   :  { %v239_v34 = vadd.f32 %v896_v33, %v1178_v54  ;;  %v230_v35 = vpop.f32.mrb[13].mxu0 }
  0xf7   :  { %v231_v36 = vadd.f32 %v1178_v54, %v230_v35  ;;  %v897_v37 = vpop.f32.mrb[14].mxu0  ;;  %930 = vmatprep.mubr.msk.bf16.mxu1 %vm396_vm1, %v354_v32 }
  0xf8   :  { %v242_v38 = vadd.f32 %v897_v37, %v1178_v54  ;;  %v233_v39 = vpop.f32.mrb[15].mxu0  ;;  %931 = vmatmul.mubr.msk.bf16.gmra.mrb[8].mxu1 %vm396_vm1, %v355_v31  ;;  %v323_v41 = vmax.f32 %v239_v34, 0.0 }
  0xf9   :  { %v234_v40 = vadd.f32 %v1178_v54, %v233_v39  ;;  %v321_v43 = vmax.f32 %v231_v36, 0.0 }
  0xfa   :  { %v324_v42 = vmax.f32 %v242_v38, 0.0 }
  0xfb   :  { %v322_v44 = vmax.f32 %v234_v40, 0.0  ;;  %v1231_v40 = vld [vmem:[%s1334_s5] sm:$0xf] }
  0xfc   :  { %v357_v45 = vpack.c.bf16 %v324_v42, %v323_v41  ;;  %876 = vmatprep.mubr.msk.bf16.mxu0 %vm99_vm0, %v1231_v40  ;;  %v1003_v41 = vmov 0   ;;  %v1241_v42 = vld [vmem:[%s1333_s4] ss:$0 sm:$0xff]  ;;  %s1004_s4 = smov [#allocation2]  }
  0xfd   :  { %v356_v46 = vpack.c.bf16 %v322_v44, %v321_v43  ;;  %v900_v47 = vpop.f32.mrb[16].mxu0  ;;  %964 = vset.pattern.permute.xlu0 %v1003_v41  ;;  %s773_s5 = sshll.u32 %s1004_s4, 4  ;;  %s774_s5 = int_to_ptr.vmem [resolvable:$true] %s773_s5 }
  0xfe   :  { %v255_v48 = vadd.f32 %v900_v47, %v1178_v54  ;;  %v246_v49 = vpop.f32.mrb[17].mxu0  ;;  %p984_p1 = scmp.lt.s32.totalorder %s774_s5, %s774_s5 }
  0xff   :  { %v247_v50 = vadd.f32 %v1178_v54, %v246_v49  ;;  %v901_v51 = vpop.f32.mrb[18].mxu0  ;;  %934 = vmatprep.mubr.msk.bf16.mxu1 %vm396_vm1, %v356_v46 }
 0x100   :  { %v258_v52 = vadd.f32 %v901_v51, %v1178_v54  ;;  %v249_v53 = vpop.f32.mrb[19].mxu0  ;;  %935 = vmatmul.mubr.msk.bf16.gmra.mrb[12].mxu1 %vm396_vm1, %v357_v45  ;;  %v327_v56 = vmax.f32 %v255_v48, 0.0 }
 0x101   :  { %v250_v55 = vadd.f32 %v1178_v54, %v249_v53  ;;  %v325_v58 = vmax.f32 %v247_v50, 0.0 }
 0x102   :  { %v328_v57 = vmax.f32 %v258_v52, 0.0 }
 0x103   :  { %v326_v59 = vmax.f32 %v250_v55, 0.0 }
 0x104   :  { %v359_v60 = vpack.c.bf16 %v328_v57, %v327_v56 }
 0x105   :  { %v358_v61 = vpack.c.bf16 %v326_v59, %v325_v58  ;;  %v904_v62 = vpop.f32.mrb[20].mxu0 }
 0x106   :  { %v271_v63 = vadd.f32 %v904_v62, %v1178_v54  ;;  %v262_v0 = vpop.f32.mrb[21].mxu0 }
 0x107   :  { %v263_v1 = vadd.f32 %v1178_v54, %v262_v0  ;;  %938 = vmatprep.mubr.msk.bf16.mxu1 %vm396_vm1, %v358_v61  ;;  %v905_v2 = vpop.f32.mrb[22].mxu0 }
 0x108   :  { %v331_v3 = vmax.f32 %v271_v63, 0.0  ;;  %v274_v4 = vadd.f32 %v905_v2, %v1178_v54  ;;  %939 = vmatmul.mubr.msk.bf16.gmra.mrb[16].mxu1 %vm396_vm1, %v359_v60  ;;  %v265_v5 = vpop.f32.mrb[23].mxu0 }
 0x109   :  { %v329_v6 = vmax.f32 %v263_v1, 0.0  ;;  %v266_v7 = vadd.f32 %v1178_v54, %v265_v5 }
 0x10a   :  { %v332_v8 = vmax.f32 %v274_v4, 0.0 }
 0x10b   :  { %v330_v9 = vmax.f32 %v266_v7, 0.0 }
 0x10c   :  { %v361_v10 = vpack.c.bf16 %v332_v8, %v331_v3 }
 0x10d   :  { %v360_v11 = vpack.c.bf16 %v330_v9, %v329_v6  ;;  %v908_v12 = vpop.f32.mrb[24].mxu0 }
 0x10e   :  { %v287_v13 = vadd.f32 %v908_v12, %v1178_v54  ;;  %v278_v14 = vpop.f32.mrb[25].mxu0 }
 0x10f   :  { %942 = vmatprep.mubr.msk.bf16.mxu1 %vm396_vm1, %v360_v11  ;;  %v279_v15 = vadd.f32 %v1178_v54, %v278_v14  ;;  %v909_v16 = vpop.f32.mrb[26].mxu0 }
 0x110   :  { %943 = vmatmul.mubr.msk.bf16.gmra.mrb[20].mxu1 %vm396_vm1, %v361_v10  ;;  %v335_v17 = vmax.f32 %v287_v13, 0.0  ;;  %v290_v18 = vadd.f32 %v909_v16, %v1178_v54  ;;  %v281_v19 = vpop.f32.mrb[27].mxu0 }
 0x111   :  { %v333_v20 = vmax.f32 %v279_v15, 0.0  ;;  %v282_v21 = vadd.f32 %v1178_v54, %v281_v19 }
 0x112   :  { %v336_v22 = vmax.f32 %v290_v18, 0.0 }
 0x113   :  { %v334_v23 = vmax.f32 %v282_v21, 0.0 }
 0x114   :  { %v363_v24 = vpack.c.bf16 %v336_v22, %v335_v17 }
 0x115   :  { %v362_v25 = vpack.c.bf16 %v334_v23, %v333_v20  ;;  %v912_v26 = vpop.f32.mrb[28].mxu0 }
 0x116   :  { %v303_v27 = vadd.f32 %v912_v26, %v1178_v54  ;;  %v294_v28 = vpop.f32.mrb[29].mxu0 }
 0x117   :  { %946 = vmatprep.mubr.msk.bf16.mxu1 %vm396_vm1, %v362_v25  ;;  %v295_v29 = vadd.f32 %v1178_v54, %v294_v28  ;;  %v913_v30 = vpop.f32.mrb[30].mxu0 }
 0x118   :  { %947 = vmatmul.mubr.msk.bf16.gmra.mrb[24].mxu1 %vm396_vm1, %v363_v24  ;;  %v339_v31 = vmax.f32 %v303_v27, 0.0  ;;  %v306_v32 = vadd.f32 %v913_v30, %v1178_v54  ;;  %v297_v33 = vpop.f32.mrb[31].mxu0 }
 0x119   :  { %v337_v34 = vmax.f32 %v295_v29, 0.0  ;;  %v298_v35 = vadd.f32 %v1178_v54, %v297_v33  ;;  %v639_v54 = vld [vmem:[%s1335_s6] sm:$0xff]  ;;  %s979_s6 = scalar_lea.vmem %s774_s5, 256 }
 0x11a   :  { %v340_v36 = vmax.f32 %v306_v32, 0.0  ;;  %658 = vperm.xlu0 %964, %v639_v54   ;;  %p980_p0 = scmp.ne.s32.totalorder %s774_s5, %s979_s6  ;;  %p985_p2 = scmp.lt.s32.totalorder %s979_s6, %s979_s6 }
 0x11b   :  { %v338_v37 = vmax.f32 %v298_v35, 0.0 }
 0x11c   :  { %v365_v38 = vpack.c.bf16 %v340_v36, %v339_v31  ;;  %p986_p3 = por %p985_p2, %p984_p1 }
 0x11d   :  { %v364_v39 = vpack.c.bf16 %v338_v37, %v337_v34 }
 0x11e   :  { %p987_p4 = pnand %p986_p3, %p980_p0 }
 0x11f   :  { %950 = vmatprep.mubr.msk.bf16.mxu1 %vm396_vm1, %v364_v39 }
 0x120   :  { %951 = vmatmul.mubr.msk.bf16.gmra.mrb[28].mxu1 %vm396_vm1, %v365_v38 }
 0x1bb   :  { %v924_v43 = vpop.f32.mrb[0].mxu1 }
 0x1bc   :  { %v488_v44 = vadd.f32 %v924_v43, %v1241_v42  ;;  %v479_v45 = vpop.f32.mrb[1].mxu1 }
 0x1bd   :  { %v480_v46 = vadd.f32 %v1241_v42, %v479_v45  ;;  %v925_v47 = vpop.f32.mrb[2].mxu1 }
 0x1be   :  { %v491_v48 = vadd.f32 %v925_v47, %v1241_v42  ;;  %v482_v49 = vpop.f32.mrb[3].mxu1  ;;  %v608_v51 = vmax.f32 %v488_v44, 0.0 }
 0x1bf   :  { %v483_v50 = vadd.f32 %v1241_v42, %v482_v49  ;;  %v606_v53 = vmax.f32 %v480_v46, 0.0 }
 0x1c0   :  { %v609_v52 = vmax.f32 %v491_v48, 0.0 }
 0x1c1   :  { %v607_v55 = vmax.f32 %v483_v50, 0.0 }
 0x1c2   :  { %v1247_v56 = vpack.c.bf16 %v609_v52, %v608_v51 }
 0x1c3   :  { %v1249_v57 = vpack.c.bf16 %v607_v55, %v606_v53  ;;  %v928_v58 = vpop.f32.mrb[4].mxu1 }
 0x1c4   :  { %v504_v59 = vadd.f32 %v928_v58, %v1241_v42  ;;  %v495_v60 = vpop.f32.mrb[5].mxu1 }
 0x1c5   :  { %v496_v61 = vadd.f32 %v1241_v42, %v495_v60  ;;  %v929_v62 = vpop.f32.mrb[6].mxu1 }
 0x1c6   :  { %v507_v63 = vadd.f32 %v929_v62, %v1241_v42  ;;  %v498_v0 = vpop.f32.mrb[7].mxu1  ;;  %v612_v2 = vmax.f32 %v504_v59, 0.0  ;;  %v665_v59 = vsel %vm99_vm0, %v1249_v57, 0  ;;  %v668_v57 = vsel %vm99_vm0, %v1247_v56, 0 }
 0x1c7   :  { %v499_v1 = vadd.f32 %v1241_v42, %v498_v0  ;;  %v610_v4 = vmax.f32 %v496_v61, 0.0 }
 0x1c8   :  { %v613_v3 = vmax.f32 %v507_v63, 0.0 }
 0x1c9   :  { %v611_v5 = vmax.f32 %v499_v1, 0.0 }
 0x1ca   :  { %v1255_v6 = vpack.c.bf16 %v613_v3, %v612_v2 }
 0x1cb   :  { %v1257_v7 = vpack.c.bf16 %v611_v5, %v610_v4  ;;  %v932_v8 = vpop.f32.mrb[8].mxu1 }
 0x1cc   :  { %v520_v9 = vadd.f32 %v932_v8, %v1241_v42  ;;  %v511_v10 = vpop.f32.mrb[9].mxu1 }
 0x1cd   :  { %v512_v11 = vadd.f32 %v1241_v42, %v511_v10  ;;  %v933_v12 = vpop.f32.mrb[10].mxu1 }
 0x1ce   :  { %v523_v13 = vadd.f32 %v933_v12, %v1241_v42  ;;  %v514_v14 = vpop.f32.mrb[11].mxu1  ;;  %v616_v16 = vmax.f32 %v520_v9, 0.0 }
 0x1cf   :  { %v515_v15 = vadd.f32 %v1241_v42, %v514_v14  ;;  %v614_v18 = vmax.f32 %v512_v11, 0.0 }
 0x1d0   :  { %v617_v17 = vmax.f32 %v523_v13, 0.0 }
 0x1d1   :  { %v615_v19 = vmax.f32 %v515_v15, 0.0 }
 0x1d2   :  { %v1263_v20 = vpack.c.bf16 %v617_v17, %v616_v16 }
 0x1d3   :  { %v1265_v21 = vpack.c.bf16 %v615_v19, %v614_v18  ;;  %v936_v22 = vpop.f32.mrb[12].mxu1 }
 0x1d4   :  { %v536_v23 = vadd.f32 %v936_v22, %v1241_v42  ;;  %v527_v24 = vpop.f32.mrb[13].mxu1 }
 0x1d5   :  { %v528_v25 = vadd.f32 %v1241_v42, %v527_v24  ;;  %v937_v26 = vpop.f32.mrb[14].mxu1 }
 0x1d6   :  { %v539_v27 = vadd.f32 %v937_v26, %v1241_v42  ;;  %v530_v28 = vpop.f32.mrb[15].mxu1  ;;  %v620_v30 = vmax.f32 %v536_v23, 0.0 }
 0x1d7   :  { %v531_v29 = vadd.f32 %v1241_v42, %v530_v28  ;;  %v618_v32 = vmax.f32 %v528_v25, 0.0  ;;  %v671_v25 = vsel %vm99_vm0, %v1257_v7, 0  ;;  %v674_v7 = vsel %vm99_vm0, %v1255_v6, 0 }
 0x1d8   :  { %v621_v31 = vmax.f32 %v539_v27, 0.0 }
 0x1d9   :  { %v619_v33 = vmax.f32 %v531_v29, 0.0 }
 0x1da   :  { %v1271_v34 = vpack.c.bf16 %v621_v31, %v620_v30 }
 0x1db   :  { %v1273_v35 = vpack.c.bf16 %v619_v33, %v618_v32  ;;  %v940_v36 = vpop.f32.mrb[16].mxu1 }
 0x1dc   :  { %v552_v37 = vadd.f32 %v940_v36, %v1241_v42  ;;  %v543_v38 = vpop.f32.mrb[17].mxu1  ;;  %v686_v6 = vsel %vm99_vm0, %v1271_v34, 0 }
 0x1dd   :  { %v544_v39 = vadd.f32 %v1241_v42, %v543_v38  ;;  %v941_v54 = vpop.f32.mrb[18].mxu1 }
 0x1de   :  { %v555_v41 = vadd.f32 %v941_v54, %v1241_v42  ;;  %v546_v43 = vpop.f32.mrb[19].mxu1  ;;  %v624_v45 = vmax.f32 %v552_v37, 0.0  ;;  %v680_v54 = vsel %vm99_vm0, %v1263_v20, 0 }
 0x1df   :  { %v547_v44 = vadd.f32 %v1241_v42, %v546_v43  ;;  %v622_v47 = vmax.f32 %v544_v39, 0.0  ;;  %v677_v39 = vsel %vm99_vm0, %v1265_v21, 0  ;;  %v659_v21 = vpop.permute.xlu0 %658 }
 0x1e0   :  { %v625_v46 = vmax.f32 %v555_v41, 0.0 }
 0x1e1   :  { %v623_v48 = vmax.f32 %v547_v44, 0.0 }
 0x1e2   :  { %v649_v49 = vpack.c.bf16 %v625_v46, %v624_v45 }
 0x1e3   :  { %v648_v50 = vpack.c.bf16 %v623_v48, %v622_v47  ;;  %v944_v51 = vpop.f32.mrb[20].mxu1 }
 0x1e4   :  { %v568_v52 = vadd.f32 %v944_v51, %v1241_v42  ;;  %v559_v53 = vpop.f32.mrb[21].mxu1 }
 0x1e5   :  { %v560_v55 = vadd.f32 %v1241_v42, %v559_v53  ;;  %954 = vmatprep.subr.msk.bf16.mxu0 %vm99_vm0, %v648_v50  ;;  %v945_v58 = vpop.f32.mrb[22].mxu1 }
 0x1e6   :  { %v628_v60 = vmax.f32 %v568_v52, 0.0  ;;  %v571_v61 = vadd.f32 %v945_v58, %v1241_v42  ;;  %861 = vmatpush3.bf16.xpose.msra.mxu0 %v665_v59  ;;  %v562_v62 = vpop.f32.mrb[23].mxu1 }
 0x1e7   :  { %v626_v63 = vmax.f32 %v560_v55, 0.0  ;;  %v563_v0 = vadd.f32 %v1241_v42, %v562_v62  ;;  %955 = vmatprep.subr.msk.bf16.mxu0 %vm99_vm0, %v649_v49 }
 0x1e8   :  { %v629_v1 = vmax.f32 %v571_v61, 0.0 }
 0x1e9   :  { %v627_v2 = vmax.f32 %v563_v0, 0.0 }
 0x1ea   :  { %v651_v3 = vpack.c.bf16 %v629_v1, %v628_v60 }
 0x1eb   :  { %v650_v4 = vpack.c.bf16 %v627_v2, %v626_v63  ;;  %v948_v5 = vpop.f32.mrb[24].mxu1 }
 0x1ec   :  { %v584_v8 = vadd.f32 %v948_v5, %v1241_v42  ;;  %v575_v9 = vpop.f32.mrb[25].mxu1 }
 0x1ed   :  { %v576_v10 = vadd.f32 %v1241_v42, %v575_v9  ;;  %v949_v11 = vpop.f32.mrb[26].mxu1 }
 0x1ee   :  { %863 = vmatpush3.bf16.xpose.msra.mxu0 %v668_v57  ;;  %v632_v12 = vmax.f32 %v584_v8, 0.0  ;;  %v587_v13 = vadd.f32 %v949_v11, %v1241_v42  ;;  %v578_v14 = vpop.f32.mrb[27].mxu1 }
 0x1ef   :  { %956 = vmatprep.subr.msk.bf16.mxu0 %vm99_vm0, %v650_v4  ;;  %v630_v15 = vmax.f32 %v576_v10, 0.0  ;;  %v579_v16 = vadd.f32 %v1241_v42, %v578_v14 }
 0x1f0   :  { %v633_v17 = vmax.f32 %v587_v13, 0.0 }
 0x1f1   :  { %v631_v18 = vmax.f32 %v579_v16, 0.0 }
 0x1f2   :  { %v653_v19 = vpack.c.bf16 %v633_v17, %v632_v12 }
 0x1f3   :  { %v652_v22 = vpack.c.bf16 %v631_v18, %v630_v15  ;;  %v952_v23 = vpop.f32.mrb[28].mxu1 }
 0x1f4   :  { %v600_v56 = vadd.f32 %v952_v23, %v1241_v42  ;;  %v591_v24 = vpop.f32.mrb[29].mxu1 }
 0x1f5   :  { %v592_v26 = vadd.f32 %v1241_v42, %v591_v24  ;;  %v953_v27 = vpop.f32.mrb[30].mxu1 }
 0x1f6   :  { %865 = vmatpush3.bf16.xpose.msra.mxu0 %v671_v25  ;;  %v636_v28 = vmax.f32 %v600_v56, 0.0  ;;  %v603_v29 = vadd.f32 %v953_v27, %v1241_v42  ;;  %v594_v30 = vpop.f32.mrb[31].mxu1 }
 0x1f7   :  { %957 = vmatprep.subr.msk.bf16.mxu0 %vm99_vm0, %v651_v3  ;;  %v634_v31 = vmax.f32 %v592_v26, 0.0  ;;  %v595_v32 = vadd.f32 %v1241_v42, %v594_v30  ;;  %v683_v42 = vsel %vm99_vm0, %v1273_v35, 0 }
 0x1f8   :  { %v637_v33 = vmax.f32 %v603_v29, 0.0 }
 0x1f9   :  { %v635_v36 = vmax.f32 %v595_v32, 0.0 }
 0x1fa   :  { %v655_v37 = vpack.c.bf16 %v637_v33, %v636_v28 }
 0x1fb   :  { %v654_v38 = vpack.c.bf16 %v635_v36, %v634_v31 }
 0x1fe   :  { %867 = vmatpush3.bf16.xpose.msra.mxu0 %v674_v7 }
 0x1ff   :  { %958 = vmatprep.subr.msk.bf16.mxu0 %vm99_vm0, %v652_v22 }
 0x206   :  { %869 = vmatpush3.bf16.xpose.msra.mxu0 %v677_v39 }
 0x207   :  { %959 = vmatprep.subr.msk.bf16.mxu0 %vm99_vm0, %v653_v19 }
 0x20e   :  { %871 = vmatpush3.bf16.xpose.msra.mxu0 %v680_v54 }
 0x20f   :  { %960 = vmatprep.subr.msk.bf16.mxu0 %vm99_vm0, %v654_v38 }
 0x216   :  { %873 = vmatpush3.bf16.xpose.msra.mxu0 %v683_v42 }
 0x217   :  { %961 = vmatprep.subr.msk.bf16.mxu0 %vm99_vm0, %v655_v37 }
 0x21e   :  { %875 = vmatpush3.bf16.xpose.msra.mxu0 %v686_v6 }
 0x225   :  { %877 = vmatmul.mubr.msk.bf16.vlgmr.msra.gmra.mrb[32].mxu0 %vm99_vm0, %v1231_v40 }
 0x2f8   :  { %v746_v41 = vpop.f32.mrb[32].mxu0 }
 0x2f9   :  { %v747_v43 = vadd.f32 %v746_v41, %v659_v21  ;;  %v748_v20 = vpop.f32.mrb[33].mxu0 }
 0x2fa   :  { %v749_v44 = vadd.f32 %v748_v20, %v659_v21  ;;  %v750_v45 = vpop.f32.mrb[34].mxu0 }
 0x2fb   :  { %v753_v46 = vsub.f32 0.0, %v747_v43  ;;  %v751_v47 = vpop.f32.mrb[35].mxu0 }
 0x2fc   :  { %v754_v48 = vsub.f32 0.0, %v749_v44 }
 0x2fd   :  { %v755_v35 = vmul.f32 1.442695, %v753_v46 }
 0x2fe   :  { %v757_v49 = vmul.f32 1.442695, %v754_v48 }
 0x2ff   :  { %971 = vpow2.f32 %v755_v35 }
 0x300   :  { %973 = vpow2.f32 %v757_v49 }
 0x309   :  { %v972_v50 = vpop.eup %971 }
 0x30a   :  { %v974_v51 = vpop.eup %973  ;;  %v759_v34 = vadd.f32 1.0, %v972_v50 }
 0x30b   :  { %v760_v52 = vadd.f32 1.0, %v974_v51 }
 0x30c   :  { %975 = vrcp.f32 %v759_v34 }
 0x30d   :  { %977 = vrcp.f32 %v760_v52 }
 0x316   :  { %v976_v40 = vpop.eup %975 }
 0x317   :  { %v978_v53 = vpop.eup %977  ;;  %765 = vst [vmem:[#allocation2] sm:$0xff] %v976_v40 }
 0x318   :  { %766 = vst [vmem:[#allocation2 + $0x8] sm:$0xff] %v978_v53 }
 0x319   :  { %990 = shalt.err (!%p987_p4)
}
 0x31a   :  { %s991_s12 = scalar_lea.hbm %s1336_s7, 256 }
 0x31b   :  { %p992_p5 = scmp.ne.s32.totalorder %s1336_s7, %s991_s12  ;;  %p995_p6 = scmp.lt.u32.totalorder %s991_s12, %s1336_s7 }
 0x31d   :  { %p997_p7 = pnand %p995_p6, %p992_p5 }
 0x31f   :  { %1000 = shalt.err (!%p997_p7)
}
 0x320   :  { %776 = dma.vmem_to_hbm [thread:$0]  %s774_s5, 256, %s1336_s7, [#allocation3]  }
 0x321   :  { %1001 = dma.done.wait [#allocation3], 256  }
 0x322   :  { %1002 = vsyncadd [#allocation3], 4294967040 }
 0x323   :  { %780 = vsyncpa [#allocation3], 1 }

</bundles_post_ra>
